<compile_context>
chip_gen: v7x
topology: tpu7x:2x2x1
jax: 0.10.0
libtpu: 0.0.40
codegen_flags: <defaults>
</compile_context>

<pallas_src>
import math

import jax
import jax.numpy as jnp
from jax.experimental import pallas as pl
from jax.experimental.pallas import tpu as pltpu

_LANE_CANDIDATES = (1024, 512, 256, 128)  # lane-dense last-dim widths to try
_MIN_ROWS = 128                           # keep >= 4 grid steps at tm >= 32
_BLOCK_ELEMS_MAX = 256 * 1024             # ~1 MiB f32 input block per grid step
_TARGET_STEPS = 4                         # >= 4 steps -> real pipelining; even
                                          # -> balanced across v7x's 2 TCs
_BYPASS_ELEMS = 64 * 1024                 # below this, launch overhead dominates


def _dup_cat_kernel(x_ref, o_ref):
    # Read the input chunk once from VMEM, store it into both output copies.
    v = x_ref[...]
    o_ref[0] = v
    o_ref[1] = v


def _round_up(v, m):
    return ((v + m - 1) // m) * m


def cat_dup_dim0(x):
    """torch.cat([x, x], dim=0) for x of shape (1, C, D, H, W)."""
    assert x.shape[0] == 1
    inner = x.shape[1:]
    n = math.prod(inner)

    # Pick the widest lane-dense last dim that divides n while keeping enough
    # rows for >= 4 grid steps.  If none exists (or the tensor is tiny), fall
    # back to XLA's native concatenate: it fuses with neighbours and avoids
    # both the custom-call boundary and any pad/slice extra HBM passes.
    lane = next(
        (c for c in _LANE_CANDIDATES if n % c == 0 and n // c >= _MIN_ROWS),
        None,
    )
    if n < _BYPASS_ELEMS or lane is None:
        return jnp.concatenate([x, x], axis=0)

    m = n // lane
    x2d = jnp.reshape(x, (m, lane))  # contiguous -> free relayout

    # Row tile: ~4 even grid steps for medium tensors, capped so the
    # double-buffered footprint (6 * tm * lane * itemsize) stays ~<= 6 MiB
    # (inside v5e's 16 MiB scoped VMEM; trivial on v6e/v7x).  Multiple of 32
    # keeps the sublane tiling valid even for bf16/int8 inputs.
    tm_cap = max(32, (_BLOCK_ELEMS_MAX // lane) // 32 * 32)
    tm = min(tm_cap, max(32, _round_up(pl.cdiv(m, _TARGET_STEPS), 32)))
    grid = (pl.cdiv(m, tm),)

    itemsize = jnp.dtype(x.dtype).itemsize
    out2d = pl.pallas_call(
        _dup_cat_kernel,
        out_shape=jax.ShapeDtypeStruct((2, m, lane), x.dtype),
        grid=grid,
        in_specs=[pl.BlockSpec((tm, lane), lambda i: (i, 0))],
        out_specs=pl.BlockSpec((2, tm, lane), lambda i: (0, i, 0)),
        compiler_params=pltpu.CompilerParams(
            dimension_semantics=("parallel",)
        ),
        # Purely memory-bound: reads N, writes 2N.
        cost_estimate=pl.CostEstimate(
            flops=0, transcendentals=0, bytes_accessed=3 * n * itemsize
        ),
    )(x2d)

    return out2d.reshape((2,) + inner)


def model_forward(x1):
    # v1 = torch.cat([x1, x1])           -> (2, C, D, H, W)          [Pallas]
    v1 = cat_dup_dim0(x1)
    # v2 = v1[:, None, :, :, None]       -> (2, 1, C, D, 1, H, W)    [view glue]
    v2 = v1[:, None, :, :, None]
    # v3 = v2[0, :, :, None]             -> (1, C, 1, D, 1, H, W)    [view glue]
    v3 = v2[0, :, :, None]
    # TODO(synk): the original `v5 = torch.cat([v1, v3], 2)` raises a
    # RuntimeError in PyTorch (cat requires equal ndim; operands are 5-D and
    # 7-D), so v5 has no defined semantics to reproduce; return (v1, v3).
    return v1, v3


if __name__ == "__main__":
    key = jax.random.PRNGKey(0)
    k_small, k_big = jax.random.split(key)

    # Small input exercises the bypass path (launch overhead would dominate).
    H_s = W_s = 16
    x_small = jax.random.normal(k_small, (1, 5, 3, H_s, W_s), dtype=jnp.float32)
    v1_s, v3_s = model_forward(x_small)
    jax.block_until_ready((v1_s, v3_s))
    assert v1_s.shape == (2, 5, 3, H_s, W_s)
    assert v3_s.shape == (1, 5, 1, 3, 1, H_s, W_s)
    assert jnp.array_equal(v1_s, jnp.concatenate([x_small, x_small], axis=0))
    assert jnp.array_equal(v3_s.reshape(1, 5, 3, H_s, W_s), x_small)

    # Larger (still modest) input exercises the Pallas kernel path:
    # n = 5*3*128*128 = 245760 -> lane=1024, m=240, tm=64, grid=(4,).
    H = W = 128
    x1 = jax.random.normal(k_big, (1, 5, 3, H, W), dtype=jnp.float32)
    v1, v3 = model_forward(x1)
    jax.block_until_ready((v1, v3))

    ref_v1 = jnp.concatenate([x1, x1], axis=0)
    assert v1.shape == (2, 5, 3, H, W)
    assert v3.shape == (1, 5, 1, 3, 1, H, W)
    assert jnp.array_equal(v1, ref_v1)
    assert jnp.array_equal(v3.reshape(1, 5, 3, H, W), x1)

    print("KERNEL_OK")
</pallas_src>

<mosaic_0001>
module attributes {stable_mosaic.version = 11 : i64} {
  func.func @_dup_cat_kernel(%arg0: i32, %arg1: memref<64x1024xf32, #tpu.memory_space<vmem>>, %arg2: memref<2x64x1024xf32, #tpu.memory_space<vmem>>) attributes {dimension_semantics = [#tpu.dimension_semantics<parallel>], iteration_bounds = array<i64: 4>, scalar_prefetch = 0 : i64, scratch_operands = 0 : i64, tpu.core_type = #tpu.core_type<tc>, window_params = [{transform_indices = @transform_0, window_bounds = array<i64: 64, 1024>}, {transform_indices = @transform_1, window_bounds = array<i64: 2, 64, 1024>}]} {
    %c0 = arith.constant 0 : index
    %c0_0 = arith.constant 0 : index
    %0 = vector.load %arg1[%c0, %c0_0] : memref<64x1024xf32, #tpu.memory_space<vmem>>, vector<64x1024xf32>
    %c0_1 = arith.constant 0 : index
    %c0_2 = arith.constant 0 : index
    %c0_3 = arith.constant 0 : index
    %1 = vector.load %arg2[%c0_1, %c0_2, %c0_3] : memref<2x64x1024xf32, #tpu.memory_space<vmem>>, vector<1x64x1024xf32>
    %2 = vector.shape_cast %1 : vector<1x64x1024xf32> to vector<64x1024xf32>
    %3 = vector.shape_cast %0 : vector<64x1024xf32> to vector<1x64x1024xf32>
    tpu.vector_store %arg2[%c0_1, %c0_2, %c0_3], %3 {strides = array<i32>} : memref<2x64x1024xf32, #tpu.memory_space<vmem>>, vector<1x64x1024xf32>,
    %c1 = arith.constant 1 : index
    %c0_4 = arith.constant 0 : index
    %c0_5 = arith.constant 0 : index
    %4 = vector.load %arg2[%c1, %c0_4, %c0_5] : memref<2x64x1024xf32, #tpu.memory_space<vmem>>, vector<1x64x1024xf32>
    %5 = vector.shape_cast %4 : vector<1x64x1024xf32> to vector<64x1024xf32>
    %6 = vector.shape_cast %0 : vector<64x1024xf32> to vector<1x64x1024xf32>
    tpu.vector_store %arg2[%c1, %c0_4, %c0_5], %6 {strides = array<i32>} : memref<2x64x1024xf32, #tpu.memory_space<vmem>>, vector<1x64x1024xf32>,
    return
  }
  func.func @transform_0(%arg0: i32) -> (i32, i32) {
    %c0_i32 = arith.constant 0 : i32
    %c0_i32_0 = arith.constant 0 : i32
    return %arg0, %c0_i32 : i32, i32
  }
  func.func @transform_1(%arg0: i32) -> (i32, i32, i32) {
    %c0_i32 = arith.constant 0 : i32
    %c0_i32_0 = arith.constant 0 : i32
    %c0_i32_1 = arith.constant 0 : i32
    return %c0_i32, %arg0, %c0_i32_0 : i32, i32, i32
  }
}

</mosaic_0001>

<bundles_post_ra>
// kernel: tpu_custom_call.1
= control target key start
LH: loop header
LB: loop body
LE: loop exit
PB: predicated region body
PF: predicated region fallthrough
CT: control target
= control target key end

     0   :  { %6 = vsyncpa [#allocation3], 0  ;;  %s1040_s0 = inlined_call_operand.hbm [shape: f32[240,1024], index: 0, kind: input, shape index: {}]   ;;  %s1041_s1 = inlined_call_operand.hbm [shape: f32[2,240,1024], index: 1, kind: output, shape index: {}]  }
   0x1   :  { %8 = vsyncpa [#allocation3 + $0x1], 0 }
   0x2   :  { %9 = vsyncpa [#allocation4], 0 }
   0x3   :  { %11 = vsyncpa [#allocation4 + $0x1], 0  ;;  %s706_s6 = smov 0   ;;  %s708_s7 = smov 0  }
   0x4   :  { %s710_s8 = smov 0   ;;  %s712_s9 = smov 0  }
   0x5 LB: > { %s727_s10 = sadd.s32 4294967295, %s685_s9   ;;  %s473_s11 = sadd.s32 4294967294, %s685_s9   ;;  %s685_s9 = sphi %s712_s9, %s1049_s9   ;;  %s681_s8 = sphi %s710_s8, %s1048_s8   ;;  %s677_s7 = sphi %s708_s7, %s1047_s7   ;;  %s673_s6 = sphi %s706_s6, %s1046_s6  }
   0x6   : > { %s731_s12 = sadd.s32 1, %s685_s9   ;;  %s24_s13 = sadd.s32 1, %s681_s8 }
   0x7   : > { %s21_s14 = ssub.s32 %s685_s9, %s731_s12  ;;  %p31_p0 = scmp.ne.s32.totalorder %s681_s8, %s677_s7 }
   0x8   : > { %p22_p1 = scmp.eq.s32.totalorder %s21_s14, 0  ;;  %p32_p2 = scmp.eq.s32.totalorder %s685_s9, 0 }
   0x9   : > { %p37_p3 = scmp.ne.s32.totalorder %s677_s7, %s673_s6  ;;  %p38_p4 = scmp.eq.s32.totalorder %s727_s10, 0 }
   0xa   : > { %s743_s15 = scalar_select %p22_p1, %s681_s8, %s24_s13  }
   0xb   : > { %p33_p5 = por %p32_p2, %p31_p0  ;;  %p745_p6 = por %p38_p4, %p37_p3 }
   0xc   : > { %p61_p7 = scmp.eq.s32.totalorder %s727_s10, 3  ;;  %p67_p8 = scmp.eq.s32.totalorder %s473_s11, 3 }
   0xd   : > { %p475_p11 = scmp.ge.s32.totalorder %s685_s9, 4 }
   0xe   : > { %p750_p9 = por %p61_p7, %p31_p0  ;;  %p754_p10 = por %p67_p8, %p37_p3 }
   0xf   : > { %83 = sbr.rel (%p475_p11) target bundleno = 57 (0x39), region = 16 }
  0x10   : > { %s1044_s18 = scalar_select %p754_p10, 1, 0 }
  0x16   : > { %86 = sbr.rel (!%p33_p5) target bundleno = 57 (0x39), region = 20  ;;  %s87_s19 = sand.u32 (%p33_p5), 1, %s681_s8  }
  0x17   : > { %s477_s20 = sshll.u32 (%p33_p5), %s685_s9, 3  ;;  %s476_s21 = sshll.u32 (%p33_p5), %s87_s19, 9 }
  0x18   : > { %s93_s22 = ssub.s32 (%p33_p5), 30, %s477_s20  ;;  %s764_s25 = scalar_lea.sflag (%p33_p5), [#allocation3], %s87_s19 }
  0x19   : > { %p94_p12 = scmp.lt.s32.totalorder (%p33_p5), %s93_s22, 8  ;;  %s91_s26 = scalar_lea.vmem (%p33_p5), [#allocation2], %s476_s21 }
  0x1d   : > { %s1051_s22 = smov (!%p94_p12, %s93_s22), 8 }
  0x1e   : > { %s761_s23 = sshll.u32 %s1051_s22, 10 }
  0x1f   : > { %s99_s24 = ssub.s32 8192, %s761_s23 }
  0x20   : > { %100 = vsyncadd %s764_s25, %s99_s24  ;;  %p480_p13 = scmp.ne.s32.totalorder %s761_s23, 0  ;;  %s566_s27 = sshll.u32 %s685_s9, 13 }
  0x21   : > { %s772_s30 = scalar_lea.hbm %s1040_s0, %s566_s27  ;;  %s106_s2 = sshll.u32 %s91_s26, 4  ;;  %s774_s2 = int_to_ptr.vmem [resolvable:$true] %s106_s2 }
  0x22   : > { %s619_s3 = scalar_lea.hbm %s772_s30, %s761_s23  ;;  %s623_s11 = scalar_lea.hbm %s1040_s0, 30720 }
  0x23   : > { %p620_p0 = scmp.ne.s32.totalorder %s772_s30, %s619_s3  ;;  %p624_p3 = scmp.lt.u32.totalorder %s772_s30, %s1040_s0 }
  0x24   : > { %p625_p4 = scmp.lt.u32.totalorder %s623_s11, %s619_s3  ;;  %p627_p7 = scmp.lt.u32.totalorder %s619_s3, %s772_s30 }
  0x25   : > { %p621_p1 = pnand %p620_p0, %p480_p13 }
  0x26   : > { %p626_p5 = por %p625_p4, %p624_p3 }
  0x27   : > { %p622_p2 = pneg %p621_p1 }
  0x28   : > { %p628_p8 = por %p627_p7, %p626_p5 }
  0x2a   : > { %p629_p11 = pnand %p628_p8, %p622_p2 }
  0x2c   : > { %632 = shalt.err (!%p629_p11)
}
  0x2d   : > { %s633_s19 = scalar_lea.vmem %s774_s2, %s761_s23  ;;  %s687_s20 = smov [#allocation2]  }
  0x2e   : > { %p634_p12 = scmp.ne.s32.totalorder %s774_s2, %s633_s19  ;;  %s637_s21 = sshll.u32 %s687_s20, 4  ;;  %s638_s21 = int_to_ptr.vmem [resolvable:$false] %s637_s21 }
  0x2f   : > { %s639_s22 = scalar_lea.vmem %s638_s21, 16384  ;;  %p640_p10 = scmp.lt.s32.totalorder %s774_s2, %s638_s21 }
  0x30   : > { %p635_p0 = pnand %p634_p12, %p480_p13  ;;  %p641_p3 = scmp.lt.s32.totalorder %s639_s22, %s633_s19 }
  0x32   : > { %p636_p1 = pneg %p635_p0  ;;  %p642_p4 = por %p641_p3, %p640_p10 }
  0x34   : > { %p643_p5 = pnand %p642_p4, %p636_p1 }
  0x36   : > { %646 = shalt.err (!%p643_p5)
}
  0x37   : > { %s688_s24 = smov 1024   ;;  %s689_s26 = smov 64  }
  0x38   : > { %112 = dma.hbm_to_vmem [thread:$0]  (%p480_p13), %s772_s30, %s761_s23, %s774_s2, %s764_s25, %s688_s24, %s688_s24, %s689_s26  }
  0x39 PF: > { %p485_p2 = scmp.ge.s32.totalorder %s685_s9, 1  ;;  %p114_p7 = scmp.lt.s32.totalorder %s685_s9, 5 }
  0x3b   : > { %p115_p8 = pnand %p485_p2, %p114_p7 }
  0x3c   : > { %s804_s27 = sand.u32 (!%p115_p8), 1, %s677_s7  }
  0x3d   : > { %118 = sbr.rel (%p115_p8) target bundleno = 152 (0x98), region = 24  ;;  %s486_s28 = sshll.u32 (!%p115_p8), %s804_s27, 9 }
  0x3e   : > { %s121_s29 = scalar_lea.sflag (!%p115_p8), [#allocation3], %s804_s27  ;;  %s808_s3 = scalar_lea.vmem (!%p115_p8), [#allocation2], %s486_s28 }
  0x44   : > { %664 = dma.done.wait (%p745_p6), %s121_s29, 8192  }
  0x45   : > { %666 = vsyncadd (%p745_p6), %s121_s29, 4294959104  ;;  %s487_s23 = sshll.u32 %s804_s27, 10  ;;  %v155_v0 = vld [vmem:[%s808_s3] sm:$0xff]  ;;  %v156_v1 = vld [vmem:[%s808_s3 + $0x8] sm:$0xff]  ;;  %s349_s16 = scalar_lea.sflag [#allocation4], %s804_s27 }
  0x46   : > { %v157_v2 = vld [vmem:[%s808_s3 + $0x10] sm:$0xff]  ;;  %s818_s25 = scalar_lea.vmem [#allocation5], %s487_s23  ;;  %v158_v3 = vld [vmem:[%s808_s3 + $0x18] sm:$0xff]  ;;  %v159_v4 = vld [vmem:[%s808_s3 + $0x20] sm:$0xff] }
  0x47   : > { %219 = vst [vmem:[%s818_s25] sm:$0xff] %v155_v0  ;;  %488 = vst [vmem:[%s818_s25 + $0x200] sm:$0xff] %v155_v0  ;;  %v160_v5 = vld [vmem:[%s808_s3 + $0x28] sm:$0xff]  ;;  %v161_v6 = vld [vmem:[%s808_s3 + $0x30] sm:$0xff] }
  0x48   : > { %220 = vst [vmem:[%s818_s25 + $0x8] sm:$0xff] %v156_v1  ;;  %489 = vst [vmem:[%s818_s25 + $0x208] sm:$0xff] %v156_v1  ;;  %v162_v7 = vld [vmem:[%s808_s3 + $0x38] sm:$0xff]  ;;  %v163_v8 = vld [vmem:[%s808_s3 + $0x40] sm:$0xff] }
  0x49   : > { %221 = vst [vmem:[%s818_s25 + $0x10] sm:$0xff] %v157_v2  ;;  %490 = vst [vmem:[%s818_s25 + $0x210] sm:$0xff] %v157_v2  ;;  %v164_v9 = vld [vmem:[%s808_s3 + $0x48] sm:$0xff]  ;;  %v165_v10 = vld [vmem:[%s808_s3 + $0x50] sm:$0xff] }
  0x4a   : > { %222 = vst [vmem:[%s818_s25 + $0x18] sm:$0xff] %v158_v3  ;;  %491 = vst [vmem:[%s818_s25 + $0x218] sm:$0xff] %v158_v3  ;;  %v166_v11 = vld [vmem:[%s808_s3 + $0x58] sm:$0xff]  ;;  %v167_v12 = vld [vmem:[%s808_s3 + $0x60] sm:$0xff] }
  0x4b   : > { %223 = vst [vmem:[%s818_s25 + $0x20] sm:$0xff] %v159_v4  ;;  %492 = vst [vmem:[%s818_s25 + $0x220] sm:$0xff] %v159_v4  ;;  %v168_v13 = vld [vmem:[%s808_s3 + $0x68] sm:$0xff]  ;;  %v169_v14 = vld [vmem:[%s808_s3 + $0x70] sm:$0xff] }
  0x4c   : > { %224 = vst [vmem:[%s818_s25 + $0x28] sm:$0xff] %v160_v5  ;;  %493 = vst [vmem:[%s818_s25 + $0x228] sm:$0xff] %v160_v5  ;;  %v170_v15 = vld [vmem:[%s808_s3 + $0x78] sm:$0xff]  ;;  %v171_v16 = vld [vmem:[%s808_s3 + $0x80] sm:$0xff] }
  0x4d   : > { %225 = vst [vmem:[%s818_s25 + $0x30] sm:$0xff] %v161_v6  ;;  %494 = vst [vmem:[%s818_s25 + $0x230] sm:$0xff] %v161_v6  ;;  %v172_v17 = vld [vmem:[%s808_s3 + $0x88] sm:$0xff]  ;;  %v173_v18 = vld [vmem:[%s808_s3 + $0x90] sm:$0xff] }
  0x4e   : > { %226 = vst [vmem:[%s818_s25 + $0x38] sm:$0xff] %v162_v7  ;;  %495 = vst [vmem:[%s818_s25 + $0x238] sm:$0xff] %v162_v7  ;;  %v174_v19 = vld [vmem:[%s808_s3 + $0x98] sm:$0xff]  ;;  %v175_v20 = vld [vmem:[%s808_s3 + $0xa0] sm:$0xff] }
  0x4f   : > { %227 = vst [vmem:[%s818_s25 + $0x40] sm:$0xff] %v163_v8  ;;  %496 = vst [vmem:[%s818_s25 + $0x240] sm:$0xff] %v163_v8  ;;  %v176_v21 = vld [vmem:[%s808_s3 + $0xa8] sm:$0xff]  ;;  %v177_v22 = vld [vmem:[%s808_s3 + $0xb0] sm:$0xff] }
  0x50   : > { %228 = vst [vmem:[%s818_s25 + $0x48] sm:$0xff] %v164_v9  ;;  %497 = vst [vmem:[%s818_s25 + $0x248] sm:$0xff] %v164_v9  ;;  %v178_v23 = vld [vmem:[%s808_s3 + $0xb8] sm:$0xff]  ;;  %v179_v24 = vld [vmem:[%s808_s3 + $0xc0] sm:$0xff] }
  0x51   : > { %229 = vst [vmem:[%s818_s25 + $0x50] sm:$0xff] %v165_v10  ;;  %498 = vst [vmem:[%s818_s25 + $0x250] sm:$0xff] %v165_v10  ;;  %v180_v25 = vld [vmem:[%s808_s3 + $0xc8] sm:$0xff]  ;;  %v181_v26 = vld [vmem:[%s808_s3 + $0xd0] sm:$0xff] }
  0x52   : > { %230 = vst [vmem:[%s818_s25 + $0x58] sm:$0xff] %v166_v11  ;;  %499 = vst [vmem:[%s818_s25 + $0x258] sm:$0xff] %v166_v11  ;;  %v182_v27 = vld [vmem:[%s808_s3 + $0xd8] sm:$0xff]  ;;  %v183_v28 = vld [vmem:[%s808_s3 + $0xe0] sm:$0xff] }
  0x53   : > { %231 = vst [vmem:[%s818_s25 + $0x60] sm:$0xff] %v167_v12  ;;  %500 = vst [vmem:[%s818_s25 + $0x260] sm:$0xff] %v167_v12  ;;  %v184_v29 = vld [vmem:[%s808_s3 + $0xe8] sm:$0xff]  ;;  %v185_v30 = vld [vmem:[%s808_s3 + $0xf0] sm:$0xff] }
  0x54   : > { %232 = vst [vmem:[%s818_s25 + $0x68] sm:$0xff] %v168_v13  ;;  %501 = vst [vmem:[%s818_s25 + $0x268] sm:$0xff] %v168_v13  ;;  %v186_v31 = vld [vmem:[%s808_s3 + $0xf8] sm:$0xff]  ;;  %v187_v32 = vld [vmem:[%s808_s3 + $0x100] sm:$0xff] }
  0x55   : > { %233 = vst [vmem:[%s818_s25 + $0x70] sm:$0xff] %v169_v14  ;;  %502 = vst [vmem:[%s818_s25 + $0x270] sm:$0xff] %v169_v14  ;;  %v188_v33 = vld [vmem:[%s808_s3 + $0x108] sm:$0xff]  ;;  %v189_v34 = vld [vmem:[%s808_s3 + $0x110] sm:$0xff] }
  0x56   : > { %234 = vst [vmem:[%s818_s25 + $0x78] sm:$0xff] %v170_v15  ;;  %503 = vst [vmem:[%s818_s25 + $0x278] sm:$0xff] %v170_v15  ;;  %v190_v35 = vld [vmem:[%s808_s3 + $0x118] sm:$0xff]  ;;  %v191_v36 = vld [vmem:[%s808_s3 + $0x120] sm:$0xff] }
  0x57   : > { %235 = vst [vmem:[%s818_s25 + $0x80] sm:$0xff] %v171_v16  ;;  %504 = vst [vmem:[%s818_s25 + $0x280] sm:$0xff] %v171_v16  ;;  %v192_v37 = vld [vmem:[%s808_s3 + $0x128] sm:$0xff]  ;;  %v193_v38 = vld [vmem:[%s808_s3 + $0x130] sm:$0xff] }
  0x58   : > { %236 = vst [vmem:[%s818_s25 + $0x88] sm:$0xff] %v172_v17  ;;  %505 = vst [vmem:[%s818_s25 + $0x288] sm:$0xff] %v172_v17  ;;  %v194_v39 = vld [vmem:[%s808_s3 + $0x138] sm:$0xff]  ;;  %v195_v40 = vld [vmem:[%s808_s3 + $0x140] sm:$0xff] }
  0x59   : > { %237 = vst [vmem:[%s818_s25 + $0x90] sm:$0xff] %v173_v18  ;;  %506 = vst [vmem:[%s818_s25 + $0x290] sm:$0xff] %v173_v18  ;;  %v196_v41 = vld [vmem:[%s808_s3 + $0x148] sm:$0xff]  ;;  %v197_v42 = vld [vmem:[%s808_s3 + $0x150] sm:$0xff] }
  0x5a   : > { %238 = vst [vmem:[%s818_s25 + $0x98] sm:$0xff] %v174_v19  ;;  %507 = vst [vmem:[%s818_s25 + $0x298] sm:$0xff] %v174_v19  ;;  %v198_v43 = vld [vmem:[%s808_s3 + $0x158] sm:$0xff]  ;;  %v199_v44 = vld [vmem:[%s808_s3 + $0x160] sm:$0xff] }
  0x5b   : > { %239 = vst [vmem:[%s818_s25 + $0xa0] sm:$0xff] %v175_v20  ;;  %508 = vst [vmem:[%s818_s25 + $0x2a0] sm:$0xff] %v175_v20  ;;  %v200_v45 = vld [vmem:[%s808_s3 + $0x168] sm:$0xff]  ;;  %v201_v46 = vld [vmem:[%s808_s3 + $0x170] sm:$0xff] }
  0x5c   : > { %240 = vst [vmem:[%s818_s25 + $0xa8] sm:$0xff] %v176_v21  ;;  %509 = vst [vmem:[%s818_s25 + $0x2a8] sm:$0xff] %v176_v21  ;;  %v202_v47 = vld [vmem:[%s808_s3 + $0x178] sm:$0xff]  ;;  %v203_v48 = vld [vmem:[%s808_s3 + $0x180] sm:$0xff] }
  0x5d   : > { %241 = vst [vmem:[%s818_s25 + $0xb0] sm:$0xff] %v177_v22  ;;  %510 = vst [vmem:[%s818_s25 + $0x2b0] sm:$0xff] %v177_v22  ;;  %v204_v49 = vld [vmem:[%s808_s3 + $0x188] sm:$0xff]  ;;  %v205_v50 = vld [vmem:[%s808_s3 + $0x190] sm:$0xff] }
  0x5e   : > { %242 = vst [vmem:[%s818_s25 + $0xb8] sm:$0xff] %v178_v23  ;;  %511 = vst [vmem:[%s818_s25 + $0x2b8] sm:$0xff] %v178_v23  ;;  %v206_v51 = vld [vmem:[%s808_s3 + $0x198] sm:$0xff]  ;;  %v207_v52 = vld [vmem:[%s808_s3 + $0x1a0] sm:$0xff] }
  0x5f   : > { %243 = vst [vmem:[%s818_s25 + $0xc0] sm:$0xff] %v179_v24  ;;  %512 = vst [vmem:[%s818_s25 + $0x2c0] sm:$0xff] %v179_v24  ;;  %v208_v53 = vld [vmem:[%s808_s3 + $0x1a8] sm:$0xff]  ;;  %v209_v54 = vld [vmem:[%s808_s3 + $0x1b0] sm:$0xff] }
  0x60   : > { %244 = vst [vmem:[%s818_s25 + $0xc8] sm:$0xff] %v180_v25  ;;  %513 = vst [vmem:[%s818_s25 + $0x2c8] sm:$0xff] %v180_v25  ;;  %v210_v55 = vld [vmem:[%s808_s3 + $0x1b8] sm:$0xff]  ;;  %v211_v56 = vld [vmem:[%s808_s3 + $0x1c0] sm:$0xff] }
  0x61   : > { %245 = vst [vmem:[%s818_s25 + $0xd0] sm:$0xff] %v181_v26  ;;  %514 = vst [vmem:[%s818_s25 + $0x2d0] sm:$0xff] %v181_v26  ;;  %v212_v57 = vld [vmem:[%s808_s3 + $0x1c8] sm:$0xff]  ;;  %v213_v58 = vld [vmem:[%s808_s3 + $0x1d0] sm:$0xff] }
  0x62   : > { %246 = vst [vmem:[%s818_s25 + $0xd8] sm:$0xff] %v182_v27  ;;  %515 = vst [vmem:[%s818_s25 + $0x2d8] sm:$0xff] %v182_v27  ;;  %v214_v59 = vld [vmem:[%s808_s3 + $0x1d8] sm:$0xff]  ;;  %v215_v60 = vld [vmem:[%s808_s3 + $0x1e0] sm:$0xff] }
  0x63   : > { %247 = vst [vmem:[%s818_s25 + $0xe0] sm:$0xff] %v183_v28  ;;  %516 = vst [vmem:[%s818_s25 + $0x2e0] sm:$0xff] %v183_v28  ;;  %v216_v61 = vld [vmem:[%s808_s3 + $0x1e8] sm:$0xff]  ;;  %v217_v62 = vld [vmem:[%s808_s3 + $0x1f0] sm:$0xff] }
  0x64   : > { %248 = vst [vmem:[%s818_s25 + $0xe8] sm:$0xff] %v184_v29  ;;  %517 = vst [vmem:[%s818_s25 + $0x2e8] sm:$0xff] %v184_v29  ;;  %v218_v63 = vld [vmem:[%s808_s3 + $0x1f8] sm:$0xff] }
  0x65   : > { %249 = vst [vmem:[%s818_s25 + $0xf0] sm:$0xff] %v185_v30  ;;  %518 = vst [vmem:[%s818_s25 + $0x2f0] sm:$0xff] %v185_v30 }
  0x66   : > { %250 = vst [vmem:[%s818_s25 + $0xf8] sm:$0xff] %v186_v31  ;;  %519 = vst [vmem:[%s818_s25 + $0x2f8] sm:$0xff] %v186_v31 }
  0x67   : > { %251 = vst [vmem:[%s818_s25 + $0x100] sm:$0xff] %v187_v32  ;;  %520 = vst [vmem:[%s818_s25 + $0x300] sm:$0xff] %v187_v32 }
  0x68   : > { %252 = vst [vmem:[%s818_s25 + $0x108] sm:$0xff] %v188_v33  ;;  %521 = vst [vmem:[%s818_s25 + $0x308] sm:$0xff] %v188_v33 }
  0x69   : > { %253 = vst [vmem:[%s818_s25 + $0x110] sm:$0xff] %v189_v34  ;;  %522 = vst [vmem:[%s818_s25 + $0x310] sm:$0xff] %v189_v34 }
  0x6a   : > { %254 = vst [vmem:[%s818_s25 + $0x118] sm:$0xff] %v190_v35  ;;  %523 = vst [vmem:[%s818_s25 + $0x318] sm:$0xff] %v190_v35 }
  0x6b   : > { %255 = vst [vmem:[%s818_s25 + $0x120] sm:$0xff] %v191_v36  ;;  %524 = vst [vmem:[%s818_s25 + $0x320] sm:$0xff] %v191_v36 }
  0x6c   : > { %256 = vst [vmem:[%s818_s25 + $0x128] sm:$0xff] %v192_v37  ;;  %525 = vst [vmem:[%s818_s25 + $0x328] sm:$0xff] %v192_v37 }
  0x6d   : > { %257 = vst [vmem:[%s818_s25 + $0x130] sm:$0xff] %v193_v38  ;;  %526 = vst [vmem:[%s818_s25 + $0x330] sm:$0xff] %v193_v38 }
  0x6e   : > { %258 = vst [vmem:[%s818_s25 + $0x138] sm:$0xff] %v194_v39  ;;  %527 = vst [vmem:[%s818_s25 + $0x338] sm:$0xff] %v194_v39 }
  0x6f   : > { %259 = vst [vmem:[%s818_s25 + $0x140] sm:$0xff] %v195_v40  ;;  %528 = vst [vmem:[%s818_s25 + $0x340] sm:$0xff] %v195_v40 }
  0x70   : > { %260 = vst [vmem:[%s818_s25 + $0x148] sm:$0xff] %v196_v41  ;;  %529 = vst [vmem:[%s818_s25 + $0x348] sm:$0xff] %v196_v41 }
  0x71   : > { %261 = vst [vmem:[%s818_s25 + $0x150] sm:$0xff] %v197_v42  ;;  %530 = vst [vmem:[%s818_s25 + $0x350] sm:$0xff] %v197_v42 }
  0x72   : > { %262 = vst [vmem:[%s818_s25 + $0x158] sm:$0xff] %v198_v43  ;;  %531 = vst [vmem:[%s818_s25 + $0x358] sm:$0xff] %v198_v43 }
  0x73   : > { %263 = vst [vmem:[%s818_s25 + $0x160] sm:$0xff] %v199_v44  ;;  %532 = vst [vmem:[%s818_s25 + $0x360] sm:$0xff] %v199_v44 }
  0x74   : > { %264 = vst [vmem:[%s818_s25 + $0x168] sm:$0xff] %v200_v45  ;;  %533 = vst [vmem:[%s818_s25 + $0x368] sm:$0xff] %v200_v45 }
  0x75   : > { %265 = vst [vmem:[%s818_s25 + $0x170] sm:$0xff] %v201_v46  ;;  %534 = vst [vmem:[%s818_s25 + $0x370] sm:$0xff] %v201_v46 }
  0x76   : > { %266 = vst [vmem:[%s818_s25 + $0x178] sm:$0xff] %v202_v47  ;;  %535 = vst [vmem:[%s818_s25 + $0x378] sm:$0xff] %v202_v47 }
  0x77   : > { %267 = vst [vmem:[%s818_s25 + $0x180] sm:$0xff] %v203_v48  ;;  %536 = vst [vmem:[%s818_s25 + $0x380] sm:$0xff] %v203_v48 }
  0x78   : > { %268 = vst [vmem:[%s818_s25 + $0x188] sm:$0xff] %v204_v49  ;;  %537 = vst [vmem:[%s818_s25 + $0x388] sm:$0xff] %v204_v49 }
  0x79   : > { %269 = vst [vmem:[%s818_s25 + $0x190] sm:$0xff] %v205_v50  ;;  %538 = vst [vmem:[%s818_s25 + $0x390] sm:$0xff] %v205_v50 }
  0x7a   : > { %270 = vst [vmem:[%s818_s25 + $0x198] sm:$0xff] %v206_v51  ;;  %539 = vst [vmem:[%s818_s25 + $0x398] sm:$0xff] %v206_v51 }
  0x7b   : > { %271 = vst [vmem:[%s818_s25 + $0x1a0] sm:$0xff] %v207_v52  ;;  %540 = vst [vmem:[%s818_s25 + $0x3a0] sm:$0xff] %v207_v52 }
  0x7c   : > { %272 = vst [vmem:[%s818_s25 + $0x1a8] sm:$0xff] %v208_v53  ;;  %541 = vst [vmem:[%s818_s25 + $0x3a8] sm:$0xff] %v208_v53 }
  0x7d   : > { %273 = vst [vmem:[%s818_s25 + $0x1b0] sm:$0xff] %v209_v54  ;;  %542 = vst [vmem:[%s818_s25 + $0x3b0] sm:$0xff] %v209_v54 }
  0x7e   : > { %274 = vst [vmem:[%s818_s25 + $0x1b8] sm:$0xff] %v210_v55  ;;  %543 = vst [vmem:[%s818_s25 + $0x3b8] sm:$0xff] %v210_v55 }
  0x7f   : > { %275 = vst [vmem:[%s818_s25 + $0x1c0] sm:$0xff] %v211_v56  ;;  %544 = vst [vmem:[%s818_s25 + $0x3c0] sm:$0xff] %v211_v56 }
  0x80   : > { %276 = vst [vmem:[%s818_s25 + $0x1c8] sm:$0xff] %v212_v57  ;;  %545 = vst [vmem:[%s818_s25 + $0x3c8] sm:$0xff] %v212_v57  ;;  %355 = sbr.rel (!%p750_p9) target bundleno = 152 (0x98), region = 32 }
  0x81   : > { %277 = vst [vmem:[%s818_s25 + $0x1d0] sm:$0xff] %v213_v58  ;;  %546 = vst [vmem:[%s818_s25 + $0x3d0] sm:$0xff] %v213_v58 }
  0x82   : > { %278 = vst [vmem:[%s818_s25 + $0x1d8] sm:$0xff] %v214_v59  ;;  %547 = vst [vmem:[%s818_s25 + $0x3d8] sm:$0xff] %v214_v59 }
  0x83   : > { %279 = vst [vmem:[%s818_s25 + $0x1e0] sm:$0xff] %v215_v60  ;;  %548 = vst [vmem:[%s818_s25 + $0x3e0] sm:$0xff] %v215_v60 }
  0x84   : > { %280 = vst [vmem:[%s818_s25 + $0x1e8] sm:$0xff] %v216_v61  ;;  %549 = vst [vmem:[%s818_s25 + $0x3e8] sm:$0xff] %v216_v61 }
  0x85   : > { %281 = vst [vmem:[%s818_s25 + $0x1f0] sm:$0xff] %v217_v62  ;;  %550 = vst [vmem:[%s818_s25 + $0x3f0] sm:$0xff] %v217_v62 }
  0x86   : > { %282 = vst [vmem:[%s818_s25 + $0x1f8] sm:$0xff] %v218_v63  ;;  %551 = vst [vmem:[%s818_s25 + $0x3f8] sm:$0xff] %v218_v63 }
  0x87   : > { %s553_s30 = sshll.u32 %s727_s10, 3 }
  0x88   : > { %s357_s2 = ssub.s32 30, %s553_s30 }
  0x89   : > { %p358_p6 = scmp.lt.s32.totalorder %s357_s2, 8 }
  0x8b   : > { %s1053_s2 = smov (!%p358_p6, %s357_s2), 8 }
  0x8c   : > { %s567_s4 = sshll.u32 %s1053_s2, 11 }
  0x8d   : > { %s363_s5 = ssub.s32 16384, %s567_s4 }
  0x8e   : > { %364 = vsyncadd %s349_s16, %s363_s5  ;;  %p556_p10 = scmp.ne.s32.totalorder %s567_s4, 0  ;;  %s569_s11 = sshll.u32 %s727_s10, 13 }
  0x8f   : > { %s368_s17 = scalar_lea.hbm %s1041_s1, %s569_s11  ;;  %s387_s19 = sshll.u32 %s818_s25, 4  ;;  %s388_s19 = int_to_ptr.vmem [resolvable:$true] %s387_s19 }
  0x90   : > { %s690_s20 = smov 8192   ;;  %s691_s21 = smov 30720  }
  0x91   : > { %394 = sst [smem:[#allocation7]] %s690_s20  ;;  %s692_s22 = smov 1024  }
  0x92   : > { %396 = sst [smem:[#allocation7 + $0x1]] %s691_s21  ;;  %s693_s24 = smov 64  }
  0x93   : > { %398 = sst [smem:[#allocation7 + $0x2]] %s1053_s2  ;;  %s694_s26 = smov [#allocation6]  }
  0x94   : > { %400 = sst [smem:[#allocation7 + $0x3]] %s692_s22  ;;  %s695_s28 = smov 0  }
  0x95   : > { %402 = sst [smem:[#allocation7 + $0x4]] %s692_s22 }
  0x96   : > { %404 = sst [smem:[#allocation7 + $0x5]] %s693_s24 }
  0x97   : > { %406 = dma.general (%p556_p10), %s388_s19, %s567_s4, %s368_s17, %s349_s16, %s694_s26, [#allocation7], %s695_s28, 0  }
  0x98 PF: > { %p578_p9 = scmp.ge.s32.totalorder %s685_s9, 2  ;;  %s415_s10 = sand.u32 1, %s673_s6  }
  0x99   : > { %p1045_p13 = scmp.ne.s32.totalorder %s1044_s18, 0  ;;  %s416_s29 = scalar_lea.sflag [#allocation4], %s415_s10 }
  0x9b   : > { %p575_p11 = pnand %p578_p9, %p1045_p13 }
  0x9d   : > { %668 = dma.done.wait (!%p575_p11), %s416_s29, 16384  }
  0x9e   : > { %670 = vsyncadd (!%p575_p11), %s416_s29, 4294950912  ;;  %p14_p12 = scmp.ge.s32.totalorder %s731_s12, 6   ;;  %s1046_s6 = smov %s677_s7 }
  0x9f   : > { %s1047_s7 = smov %s681_s8  ;;  %s1048_s8 = smov %s743_s15 }
  0xa0   : > { %s1049_s9 = smov %s731_s12  ;;  %16 = sbr.rel (!%p14_p12) target bundleno = 5 (0x5), region = 75 }
  0xa7   :  { %421 = vsyncpa [#allocation3], 1 }
  0xa8   :  { %423 = vsyncpa [#allocation3 + $0x1], 1 }
  0xa9   :  { %424 = vsyncpa [#allocation4], 1 }
  0xaa   :  { %426 = vsyncpa [#allocation4 + $0x1], 1 }

</bundles_post_ra>
